<compile_context>
chip_gen: v7x
topology: tpu7x:2x2x1
jax: 0.10.0
libtpu: 0.0.40
codegen_flags: <defaults>
</compile_context>

<pallas_src>
import numpy as np
import jax
import jax.numpy as jnp
from jax import lax
from jax.experimental import pallas as pl
from jax.experimental.pallas import tpu as pltpu

# Model hyperparameters from TCNModel.__init__
NUM_CHANNELS = (32, 64)
KERNEL_SIZE = 3
DILATIONS = (1, 2)

PARAM_WIDTH = max(NUM_CHANNELS)   # lane width of the packed parameter buffer

# Matmul-operand dtype. f32 keeps the 5e-3 tolerance at these tiny shapes
# (launch/latency bound). Set to jnp.bfloat16 for large B*T on v6e/v7x: only
# the dot operands are cast (f32 accumulate, f32 element-wise everywhere).
MATMUL_DTYPE = jnp.float32


def _round8(n):
    return ((n + 7) // 8) * 8


# ----------------------------------------------------------------------------
# Single packed parameter buffer: row layout + host-side packing.
# Conv weights are packed tap-major as (K*Cin, Cout); biases as single rows.
# Every segment starts at a multiple of 8 rows (sublane aligned), so the fused
# (K*Cin, Cout) weight slice per conv is one aligned static read.
# ----------------------------------------------------------------------------
def _param_layout(input_dim):
    c1, c2 = NUM_CHANNELS
    K = KERNEL_SIZE
    entries = [
        ("w1a", K * input_dim, c1), ("w1b", K * c1, c1), ("w1d", input_dim, c1),
        ("w2a", K * c1, c2), ("w2b", K * c2, c2), ("w2d", c1, c2),
        ("fcw", c2, 1),
        ("b1a", 1, c1), ("b1b", 1, c1), ("b1d", 1, c1),
        ("b2a", 1, c2), ("b2b", 1, c2), ("b2d", 1, c2), ("fcb", 1, 1),
    ]
    layout, off = {}, 0
    for name, rows, cols in entries:
        layout[name] = (off, rows, cols)
        off += _round8(rows)
    return layout, off


def _pack_params(params, input_dim):
    layout, total_rows = _param_layout(input_dim)
    buf = jnp.zeros((total_rows, PARAM_WIDTH), jnp.float32)
    for name, (off, rows, cols) in layout.items():
        val = jnp.asarray(params[name], jnp.float32).reshape(rows, cols)
        buf = buf.at[off:off + rows, :cols].set(val)
    return buf, layout


# ----------------------------------------------------------------------------
# Pallas kernel: the whole forward (2 TemporalBlocks + final Linear) fused.
# One grid step processes a batch tile of `bt` sequences.
# ----------------------------------------------------------------------------
def _make_kernel(bt, T, input_dim, layout):
    K = KERNEL_SIZE
    c1, c2 = NUM_CHANNELS
    d1, d2 = DILATIONS
    M = bt * T                       # activation rows per grid step

    def kernel(x_ref, p_ref, o_ref, col_ref):
        # Static, sublane-aligned slice of the packed parameter buffer.
        def pslice(name):
            off, rows, cols = layout[name]
            return p_ref[pl.ds(off, rows), pl.ds(0, cols)]

        # dot boundary: cast operands only (accumulate + bias stay f32).
        def mm(a, wname, bname):
            w = pslice(wname)
            out = jnp.dot(a.astype(MATMUL_DTYPE), w.astype(MATMUL_DTYPE),
                          preferred_element_type=jnp.float32)
            return out + pslice(bname)

        # Dilated causal conv as ONE fused MXU dot:
        #   im2col built by K strided writes into col_ref (tap k at row offset
        #   shift_k, lane block k*cin), then a single 8-aligned row-0 read.
        def causal_conv(h, cin, cout, dil, wname, bname):
            width = K * cin
            max_shift = (K - 1) * dil
            # zero only the causal-pad rows of this conv's im2col columns
            col_ref[:, pl.ds(0, max_shift), pl.ds(0, width)] = jnp.zeros(
                (bt, max_shift, width), jnp.float32)
            h3 = h.reshape(bt, T, cin)
            for k in range(K):                           # static, K = 3
                shift = (K - 1 - k) * dil                # causal left shift of tap k
                col_ref[:, pl.ds(shift, T), pl.ds(k * cin, cin)] = h3
            im2col = col_ref[:, pl.ds(0, T), pl.ds(0, width)].reshape(M, width)
            return mm(im2col, wname, bname)              # (M, cout)

        x = x_ref[...].astype(jnp.float32)               # (M, input_dim), 2-D

        # --- TemporalBlock 1 (dilation 1): conv-relu-conv-relu + downsample
        h = jnp.maximum(causal_conv(x, input_dim, c1, d1, "w1a", "b1a"), 0.0)
        h = jnp.maximum(causal_conv(h, c1, c1, d1, "w1b", "b1b"), 0.0)
        h1 = h + mm(x, "w1d", "b1d")                     # (M, 32)

        # --- TemporalBlock 2 (dilation 2)
        h = jnp.maximum(causal_conv(h1, c1, c2, d2, "w2a", "b2a"), 0.0)
        h = jnp.maximum(causal_conv(h, c2, c2, d2, "w2b", "b2b"), 0.0)
        h2 = h + mm(h1, "w2d", "b2d")                    # (M, 64)

        # --- fc on the last time step: slice straight from the value.
        last = h2.reshape(bt, T, c2)[:, T - 1, :]        # (bt, 64)
        o_ref[...] = mm(last, "fcw", "fcb").astype(o_ref.dtype)

    return kernel


# ----------------------------------------------------------------------------
# Wrapper. x is (B, T, input_dim) -- exactly what TCNModel.forward receives
# (the torch model does the NCL transpose itself).
# batch_tile: rows of the 'parallel' batch grid per step.  Default B (one
# step).  For large B on v7x pass a multiple of 8 that divides B so the grid
# is sharded across both TensorCores; keep the per-step live set (~0.9 KiB f32
# per B*T row + 2x input buffering) under the scoped VMEM limit (32 MiB
# default; v7x has 64 MiB total vs 128 MiB on v5e/v6e).
# ----------------------------------------------------------------------------
def tcn_forward(x, params, *, batch_tile=None):
    B, T, input_dim = x.shape
    if batch_tile is None:
        batch_tile = B
    assert B % batch_tile == 0, "batch_tile must divide B"
    nb = B // batch_tile
    if nb > 1:
        assert batch_tile % 8 == 0, "batch_tile must be a multiple of 8 when tiling"

    p_buf, layout = _pack_params(params, input_dim)
    kernel = _make_kernel(batch_tile, T, input_dim, layout)
    im2col_width = KERNEL_SIZE * max(input_dim, *NUM_CHANNELS)

    # Dense 2-D input DMA (lane-sparse 3-D copy avoided).
    x2d = x.reshape(B * T, input_dim).astype(jnp.float32)

    return pl.pallas_call(
        kernel,
        out_shape=jax.ShapeDtypeStruct((B, 1), jnp.float32),
        grid=(nb,),
        in_specs=[
            pl.BlockSpec((batch_tile * T, input_dim), lambda i: (i, 0)),
            pl.BlockSpec(p_buf.shape, lambda i: (0, 0)),
        ],
        out_specs=pl.BlockSpec((batch_tile, 1), lambda i: (i, 0)),
        scratch_shapes=[
            pltpu.VMEM((batch_tile, T + 8, im2col_width), jnp.float32)],
        compiler_params=pltpu.CompilerParams(
            dimension_semantics=("parallel",)),
    )(x2d, p_buf)


# ----------------------------------------------------------------------------
# Deterministic parameter init (same shapes/fan-in scaling as nn.Conv1d/Linear).
# Conv weights are stored in kernel layout (K, Cin, Cout); biases as (1, Cout).
# (Real PyTorch Conv1d checkpoints are (Cout, Cin, K): transpose before use.)
# ----------------------------------------------------------------------------
def init_params(key, input_dim):
    c1, c2 = NUM_CHANNELS
    K = KERNEL_SIZE

    def uni(k, shape, fan_in):
        bound = 1.0 / np.sqrt(fan_in)
        return jax.random.uniform(k, shape, jnp.float32, -bound, bound)

    ks = jax.random.split(key, 14)
    return {
        "w1a": uni(ks[0], (K, input_dim, c1), input_dim * K),
        "b1a": uni(ks[1], (1, c1), input_dim * K),
        "w1b": uni(ks[2], (K, c1, c1), c1 * K),
        "b1b": uni(ks[3], (1, c1), c1 * K),
        "w1d": uni(ks[4], (input_dim, c1), input_dim),   # 1x1 downsample conv
        "b1d": uni(ks[5], (1, c1), input_dim),
        "w2a": uni(ks[6], (K, c1, c2), c1 * K),
        "b2a": uni(ks[7], (1, c2), c1 * K),
        "w2b": uni(ks[8], (K, c2, c2), c2 * K),
        "b2b": uni(ks[9], (1, c2), c2 * K),
        "w2d": uni(ks[10], (c1, c2), c1),                # 1x1 downsample conv
        "b2d": uni(ks[11], (1, c2), c1),
        "fcw": uni(ks[12], (c2, 1), c2),
        "fcb": uni(ks[13], (1, 1), c2),
    }


# ----------------------------------------------------------------------------
# Plain-JAX reference (lax.conv_general_dilated with causal left padding).
# ----------------------------------------------------------------------------
def ref_forward(x, p):
    def conv1d(h, w_kio, b, d):
        K = w_kio.shape[0]
        pad = (K - 1) * d
        w_oik = jnp.transpose(w_kio, (2, 1, 0))          # (Cout, Cin, K)
        y = lax.conv_general_dilated(
            jnp.transpose(h, (0, 2, 1)), w_oik, window_strides=(1,),
            padding=[(pad, 0)], rhs_dilation=(d,),
            dimension_numbers=("NCH", "OIH", "NCH"))
        y = y + b.reshape(1, -1, 1)
        return jnp.transpose(y, (0, 2, 1))

    h = jax.nn.relu(conv1d(x, p["w1a"], p["b1a"], DILATIONS[0]))
    h = jax.nn.relu(conv1d(h, p["w1b"], p["b1b"], DILATIONS[0]))
    h1 = h + (x @ p["w1d"] + p["b1d"])
    h = jax.nn.relu(conv1d(h1, p["w2a"], p["b2a"], DILATIONS[1]))
    h = jax.nn.relu(conv1d(h, p["w2b"], p["b2b"], DILATIONS[1]))
    h2 = h + (h1 @ p["w2d"] + p["b2d"])
    return h2[:, -1, :] @ p["fcw"] + p["fcb"]


if __name__ == "__main__":
    B, T, input_dim = 2, 16, 4
    key = jax.random.PRNGKey(0)
    kx, kp = jax.random.split(key)
    x = jax.random.normal(kx, (B, T, input_dim), jnp.float32)
    params = init_params(kp, input_dim)

    out = jax.block_until_ready(tcn_forward(x, params))
    assert out.shape == (B, 1) and out.dtype == jnp.float32

    with jax.default_matmul_precision("highest"):
        ref = ref_forward(x, params)
    assert bool(jnp.allclose(out, ref, rtol=5e-3, atol=5e-3)), (out, ref)

    print("KERNEL_OK")
</pallas_src>

<mosaic_0001>
module attributes {stable_mosaic.version = 11 : i64} {
  func.func @kernel(%arg0: i32, %arg1: memref<32x4xf32, #tpu.memory_space<vmem>>, %arg2: memref<560x64xf32, #tpu.memory_space<vmem>>, %arg3: memref<2x1xf32, #tpu.memory_space<vmem>>, %arg4: memref<2x24x192xf32, #tpu.memory_space<vmem>>) attributes {dimension_semantics = [#tpu.dimension_semantics<parallel>], iteration_bounds = array<i64: 1>, scalar_prefetch = 0 : i64, scratch_operands = 1 : i64, tpu.core_type = #tpu.core_type<tc>, window_params = [{transform_indices = @transform_0, window_bounds = array<i64: 32, 4>}, {pipeline_mode = #tpu.pipeline_mode<synchronous>, transform_indices = @transform_1, window_bounds = array<i64: 560, 64>}, {transform_indices = @transform_2, window_bounds = array<i64: 2, 1>}]} {
    %c0 = arith.constant 0 : index
    %c0_0 = arith.constant 0 : index
    %0 = vector.load %arg1[%c0, %c0_0] : memref<32x4xf32, #tpu.memory_space<vmem>>, vector<32x4xf32>
    %cst = arith.constant 0.000000e+00 : f32
    %1 = vector.broadcast %cst : f32 to vector<2x2x12xf32>
    %c0_1 = arith.constant 0 : index
    %c0_2 = arith.constant 0 : index
    %c0_3 = arith.constant 0 : index
    %2 = vector.load %arg4[%c0_1, %c0_2, %c0_3] : memref<2x24x192xf32, #tpu.memory_space<vmem>>, vector<2x2x12xf32>
    tpu.vector_store %arg4[%c0_1, %c0_2, %c0_3], %1 {strides = array<i32>} : memref<2x24x192xf32, #tpu.memory_space<vmem>>, vector<2x2x12xf32>,
    %3 = vector.shape_cast %0 : vector<32x4xf32> to vector<2x16x4xf32>
    %c0_4 = arith.constant 0 : index
    %c2 = arith.constant 2 : index
    %c0_5 = arith.constant 0 : index
    %4 = vector.load %arg4[%c0_4, %c2, %c0_5] : memref<2x24x192xf32, #tpu.memory_space<vmem>>, vector<2x16x4xf32>
    tpu.vector_store %arg4[%c0_4, %c2, %c0_5], %3 {strides = array<i32>} : memref<2x24x192xf32, #tpu.memory_space<vmem>>, vector<2x16x4xf32>,
    %c0_6 = arith.constant 0 : index
    %c1 = arith.constant 1 : index
    %c4 = arith.constant 4 : index
    %5 = vector.load %arg4[%c0_6, %c1, %c4] : memref<2x24x192xf32, #tpu.memory_space<vmem>>, vector<2x16x4xf32>
    tpu.vector_store %arg4[%c0_6, %c1, %c4], %3 {strides = array<i32>} : memref<2x24x192xf32, #tpu.memory_space<vmem>>, vector<2x16x4xf32>,
    %c0_7 = arith.constant 0 : index
    %c0_8 = arith.constant 0 : index
    %c8 = arith.constant 8 : index
    %6 = vector.load %arg4[%c0_7, %c0_8, %c8] : memref<2x24x192xf32, #tpu.memory_space<vmem>>, vector<2x16x4xf32>
    tpu.vector_store %arg4[%c0_7, %c0_8, %c8], %3 {strides = array<i32>} : memref<2x24x192xf32, #tpu.memory_space<vmem>>, vector<2x16x4xf32>,
    %c0_9 = arith.constant 0 : index
    %c0_10 = arith.constant 0 : index
    %c0_11 = arith.constant 0 : index
    %7 = vector.load %arg4[%c0_9, %c0_10, %c0_11] : memref<2x24x192xf32, #tpu.memory_space<vmem>>, vector<2x16x12xf32>
    %8 = vector.shape_cast %7 : vector<2x16x12xf32> to vector<32x12xf32>
    %c0_12 = arith.constant 0 : index
    %c0_13 = arith.constant 0 : index
    %9 = vector.load %arg2[%c0_12, %c0_13] : memref<560x64xf32, #tpu.memory_space<vmem>>, vector<12x32xf32>
    %cst_14 = arith.constant dense<0.000000e+00> : vector<32x32xf32>
    %10 = tpu.matmul %8, %9, %cst_14 {dimension_numbers = #tpu.dot_dimension_numbers<[1], [0], [0], [1], [0, 0, 1, 1], [], []>} : vector<32x12xf32>, vector<12x32xf32>, vector<32x32xf32> -> vector<32x32xf32>
    %c504 = arith.constant 504 : index
    %c0_15 = arith.constant 0 : index
    %11 = vector.load %arg2[%c504, %c0_15] : memref<560x64xf32, #tpu.memory_space<vmem>>, vector<1x32xf32>
    %12 = vector.broadcast %11 : vector<1x32xf32> to vector<32x32xf32>
    %13 = arith.addf %10, %12 : vector<32x32xf32>
    %cst_16 = arith.constant 0.000000e+00 : f32
    %14 = vector.broadcast %cst_16 : f32 to vector<32x32xf32>
    %15 = arith.maximumf %13, %14 : vector<32x32xf32>
    %cst_17 = arith.constant 0.000000e+00 : f32
    %16 = vector.broadcast %cst_17 : f32 to vector<2x2x96xf32>
    %c0_18 = arith.constant 0 : index
    %c0_19 = arith.constant 0 : index
    %c0_20 = arith.constant 0 : index
    %17 = vector.load %arg4[%c0_18, %c0_19, %c0_20] : memref<2x24x192xf32, #tpu.memory_space<vmem>>, vector<2x2x96xf32>
    tpu.vector_store %arg4[%c0_18, %c0_19, %c0_20], %16 {strides = array<i32>} : memref<2x24x192xf32, #tpu.memory_space<vmem>>, vector<2x2x96xf32>,
    %18 = vector.shape_cast %15 : vector<32x32xf32> to vector<2x16x32xf32>
    %c0_21 = arith.constant 0 : index
    %c2_22 = arith.constant 2 : index
    %c0_23 = arith.constant 0 : index
    %19 = vector.load %arg4[%c0_21, %c2_22, %c0_23] : memref<2x24x192xf32, #tpu.memory_space<vmem>>, vector<2x16x32xf32>
    tpu.vector_store %arg4[%c0_21, %c2_22, %c0_23], %18 {strides = array<i32>} : memref<2x24x192xf32, #tpu.memory_space<vmem>>, vector<2x16x32xf32>,
    %c0_24 = arith.constant 0 : index
    %c1_25 = arith.constant 1 : index
    %c32 = arith.constant 32 : index
    %20 = vector.load %arg4[%c0_24, %c1_25, %c32] : memref<2x24x192xf32, #tpu.memory_space<vmem>>, vector<2x16x32xf32>
    tpu.vector_store %arg4[%c0_24, %c1_25, %c32], %18 {strides = array<i32>} : memref<2x24x192xf32, #tpu.memory_space<vmem>>, vector<2x16x32xf32>,
    %c0_26 = arith.constant 0 : index
    %c0_27 = arith.constant 0 : index
    %c64 = arith.constant 64 : index
    %21 = vector.load %arg4[%c0_26, %c0_27, %c64] : memref<2x24x192xf32, #tpu.memory_space<vmem>>, vector<2x16x32xf32>
    tpu.vector_store %arg4[%c0_26, %c0_27, %c64], %18 {strides = array<i32>} : memref<2x24x192xf32, #tpu.memory_space<vmem>>, vector<2x16x32xf32>,
    %c0_28 = arith.constant 0 : index
    %c0_29 = arith.constant 0 : index
    %c0_30 = arith.constant 0 : index
    %22 = vector.load %arg4[%c0_28, %c0_29, %c0_30] : memref<2x24x192xf32, #tpu.memory_space<vmem>>, vector<2x16x96xf32>
    %23 = vector.shape_cast %22 : vector<2x16x96xf32> to vector<32x96xf32>
    %c16 = arith.constant 16 : index
    %c0_31 = arith.constant 0 : index
    %24 = vector.load %arg2[%c16, %c0_31] : memref<560x64xf32, #tpu.memory_space<vmem>>, vector<96x32xf32>
    %cst_32 = arith.constant dense<0.000000e+00> : vector<32x32xf32>
    %25 = tpu.matmul %23, %24, %cst_32 {dimension_numbers = #tpu.dot_dimension_numbers<[1], [0], [0], [1], [0, 0, 1, 1], [], []>} : vector<32x96xf32>, vector<96x32xf32>, vector<32x32xf32> -> vector<32x32xf32>
    %c512 = arith.constant 512 : index
    %c0_33 = arith.constant 0 : index
    %26 = vector.load %arg2[%c512, %c0_33] : memref<560x64xf32, #tpu.memory_space<vmem>>, vector<1x32xf32>
    %27 = vector.broadcast %26 : vector<1x32xf32> to vector<32x32xf32>
    %28 = arith.addf %25, %27 : vector<32x32xf32>
    %cst_34 = arith.constant 0.000000e+00 : f32
    %29 = vector.broadcast %cst_34 : f32 to vector<32x32xf32>
    %30 = arith.maximumf %28, %29 : vector<32x32xf32>
    %c112 = arith.constant 112 : index
    %c0_35 = arith.constant 0 : index
    %31 = vector.load %arg2[%c112, %c0_35] : memref<560x64xf32, #tpu.memory_space<vmem>>, vector<4x32xf32>
    %cst_36 = arith.constant dense<0.000000e+00> : vector<32x32xf32>
    %32 = tpu.matmul %0, %31, %cst_36 {dimension_numbers = #tpu.dot_dimension_numbers<[1], [0], [0], [1], [0, 0, 1, 1], [], []>} : vector<32x4xf32>, vector<4x32xf32>, vector<32x32xf32> -> vector<32x32xf32>
    %c520 = arith.constant 520 : index
    %c0_37 = arith.constant 0 : index
    %33 = vector.load %arg2[%c520, %c0_37] : memref<560x64xf32, #tpu.memory_space<vmem>>, vector<1x32xf32>
    %34 = vector.broadcast %33 : vector<1x32xf32> to vector<32x32xf32>
    %35 = arith.addf %32, %34 : vector<32x32xf32>
    %36 = arith.addf %30, %35 : vector<32x32xf32>
    %cst_38 = arith.constant 0.000000e+00 : f32
    %37 = vector.broadcast %cst_38 : f32 to vector<2x4x96xf32>
    %c0_39 = arith.constant 0 : index
    %c0_40 = arith.constant 0 : index
    %c0_41 = arith.constant 0 : index
    %38 = vector.load %arg4[%c0_39, %c0_40, %c0_41] : memref<2x24x192xf32, #tpu.memory_space<vmem>>, vector<2x4x96xf32>
    tpu.vector_store %arg4[%c0_39, %c0_40, %c0_41], %37 {strides = array<i32>} : memref<2x24x192xf32, #tpu.memory_space<vmem>>, vector<2x4x96xf32>,
    %39 = vector.shape_cast %36 : vector<32x32xf32> to vector<2x16x32xf32>
    %c0_42 = arith.constant 0 : index
    %c4_43 = arith.constant 4 : index
    %c0_44 = arith.constant 0 : index
    %40 = vector.load %arg4[%c0_42, %c4_43, %c0_44] : memref<2x24x192xf32, #tpu.memory_space<vmem>>, vector<2x16x32xf32>
    tpu.vector_store %arg4[%c0_42, %c4_43, %c0_44], %39 {strides = array<i32>} : memref<2x24x192xf32, #tpu.memory_space<vmem>>, vector<2x16x32xf32>,
    %c0_45 = arith.constant 0 : index
    %c2_46 = arith.constant 2 : index
    %c32_47 = arith.constant 32 : index
    %41 = vector.load %arg4[%c0_45, %c2_46, %c32_47] : memref<2x24x192xf32, #tpu.memory_space<vmem>>, vector<2x16x32xf32>
    tpu.vector_store %arg4[%c0_45, %c2_46, %c32_47], %39 {strides = array<i32>} : memref<2x24x192xf32, #tpu.memory_space<vmem>>, vector<2x16x32xf32>,
    %c0_48 = arith.constant 0 : index
    %c0_49 = arith.constant 0 : index
    %c64_50 = arith.constant 64 : index
    %42 = vector.load %arg4[%c0_48, %c0_49, %c64_50] : memref<2x24x192xf32, #tpu.memory_space<vmem>>, vector<2x16x32xf32>
    tpu.vector_store %arg4[%c0_48, %c0_49, %c64_50], %39 {strides = array<i32>} : memref<2x24x192xf32, #tpu.memory_space<vmem>>, vector<2x16x32xf32>,
    %c0_51 = arith.constant 0 : index
    %c0_52 = arith.constant 0 : index
    %c0_53 = arith.constant 0 : index
    %43 = vector.load %arg4[%c0_51, %c0_52, %c0_53] : memref<2x24x192xf32, #tpu.memory_space<vmem>>, vector<2x16x96xf32>
    %44 = vector.shape_cast %43 : vector<2x16x96xf32> to vector<32x96xf32>
    %c120 = arith.constant 120 : index
    %c0_54 = arith.constant 0 : index
    %45 = vector.load %arg2[%c120, %c0_54] : memref<560x64xf32, #tpu.memory_space<vmem>>, vector<96x64xf32>
    %cst_55 = arith.constant dense<0.000000e+00> : vector<32x64xf32>
    %46 = tpu.matmul %44, %45, %cst_55 {dimension_numbers = #tpu.dot_dimension_numbers<[1], [0], [0], [1], [0, 0, 1, 1], [], []>} : vector<32x96xf32>, vector<96x64xf32>, vector<32x64xf32> -> vector<32x64xf32>
    %c528 = arith.constant 528 : index
    %c0_56 = arith.constant 0 : index
    %47 = vector.load %arg2[%c528, %c0_56] : memref<560x64xf32, #tpu.memory_space<vmem>>, vector<1x64xf32>
    %48 = vector.broadcast %47 : vector<1x64xf32> to vector<32x64xf32>
    %49 = arith.addf %46, %48 : vector<32x64xf32>
    %cst_57 = arith.constant 0.000000e+00 : f32
    %50 = vector.broadcast %cst_57 : f32 to vector<32x64xf32>
    %51 = arith.maximumf %49, %50 : vector<32x64xf32>
    %cst_58 = arith.constant 0.000000e+00 : f32
    %52 = vector.broadcast %cst_58 : f32 to vector<2x4x192xf32>
    %c0_59 = arith.constant 0 : index
    %c0_60 = arith.constant 0 : index
    %c0_61 = arith.constant 0 : index
    %53 = vector.load %arg4[%c0_59, %c0_60, %c0_61] : memref<2x24x192xf32, #tpu.memory_space<vmem>>, vector<2x4x192xf32>
    tpu.vector_store %arg4[%c0_59, %c0_60, %c0_61], %52 {strides = array<i32>} : memref<2x24x192xf32, #tpu.memory_space<vmem>>, vector<2x4x192xf32>,
    %54 = vector.shape_cast %51 : vector<32x64xf32> to vector<2x16x64xf32>
    %c0_62 = arith.constant 0 : index
    %c4_63 = arith.constant 4 : index
    %c0_64 = arith.constant 0 : index
    %55 = vector.load %arg4[%c0_62, %c4_63, %c0_64] : memref<2x24x192xf32, #tpu.memory_space<vmem>>, vector<2x16x64xf32>
    tpu.vector_store %arg4[%c0_62, %c4_63, %c0_64], %54 {strides = array<i32>} : memref<2x24x192xf32, #tpu.memory_space<vmem>>, vector<2x16x64xf32>,
    %c0_65 = arith.constant 0 : index
    %c2_66 = arith.constant 2 : index
    %c64_67 = arith.constant 64 : index
    %56 = vector.load %arg4[%c0_65, %c2_66, %c64_67] : memref<2x24x192xf32, #tpu.memory_space<vmem>>, vector<2x16x64xf32>
    tpu.vector_store %arg4[%c0_65, %c2_66, %c64_67], %54 {strides = array<i32>} : memref<2x24x192xf32, #tpu.memory_space<vmem>>, vector<2x16x64xf32>,
    %c0_68 = arith.constant 0 : index
    %c0_69 = arith.constant 0 : index
    %c128 = arith.constant 128 : index
    %57 = vector.load %arg4[%c0_68, %c0_69, %c128] : memref<2x24x192xf32, #tpu.memory_space<vmem>>, vector<2x16x64xf32>
    tpu.vector_store %arg4[%c0_68, %c0_69, %c128], %54 {strides = array<i32>} : memref<2x24x192xf32, #tpu.memory_space<vmem>>, vector<2x16x64xf32>,
    %c0_70 = arith.constant 0 : index
    %c0_71 = arith.constant 0 : index
    %c0_72 = arith.constant 0 : index
    %58 = vector.load %arg4[%c0_70, %c0_71, %c0_72] : memref<2x24x192xf32, #tpu.memory_space<vmem>>, vector<2x16x192xf32>
    %59 = vector.shape_cast %58 : vector<2x16x192xf32> to vector<32x192xf32>
    %c216 = arith.constant 216 : index
    %c0_73 = arith.constant 0 : index
    %60 = vector.load %arg2[%c216, %c0_73] : memref<560x64xf32, #tpu.memory_space<vmem>>, vector<192x64xf32>
    %cst_74 = arith.constant dense<0.000000e+00> : vector<32x64xf32>
    %61 = tpu.matmul %59, %60, %cst_74 {dimension_numbers = #tpu.dot_dimension_numbers<[1], [0], [0], [1], [0, 0, 1, 1], [], []>} : vector<32x192xf32>, vector<192x64xf32>, vector<32x64xf32> -> vector<32x64xf32>
    %c536 = arith.constant 536 : index
    %c0_75 = arith.constant 0 : index
    %62 = vector.load %arg2[%c536, %c0_75] : memref<560x64xf32, #tpu.memory_space<vmem>>, vector<1x64xf32>
    %63 = vector.broadcast %62 : vector<1x64xf32> to vector<32x64xf32>
    %64 = arith.addf %61, %63 : vector<32x64xf32>
    %cst_76 = arith.constant 0.000000e+00 : f32
    %65 = vector.broadcast %cst_76 : f32 to vector<32x64xf32>
    %66 = arith.maximumf %64, %65 : vector<32x64xf32>
    %c408 = arith.constant 408 : index
    %c0_77 = arith.constant 0 : index
    %67 = vector.load %arg2[%c408, %c0_77] : memref<560x64xf32, #tpu.memory_space<vmem>>, vector<32x64xf32>
    %cst_78 = arith.constant dense<0.000000e+00> : vector<32x64xf32>
    %68 = tpu.matmul %36, %67, %cst_78 {dimension_numbers = #tpu.dot_dimension_numbers<[1], [0], [0], [1], [0, 0, 1, 1], [], []>} : vector<32x32xf32>, vector<32x64xf32>, vector<32x64xf32> -> vector<32x64xf32>
    %c544 = arith.constant 544 : index
    %c0_79 = arith.constant 0 : index
    %69 = vector.load %arg2[%c544, %c0_79] : memref<560x64xf32, #tpu.memory_space<vmem>>, vector<1x64xf32>
    %70 = vector.broadcast %69 : vector<1x64xf32> to vector<32x64xf32>
    %71 = arith.addf %68, %70 : vector<32x64xf32>
    %72 = arith.addf %66, %71 : vector<32x64xf32>
    %73 = vector.shape_cast %72 : vector<32x64xf32> to vector<2x16x64xf32>
    %74 = vector.extract_strided_slice %73 {offsets = [0, 15, 0], sizes = [2, 1, 64], strides = [1, 1, 1]} : vector<2x16x64xf32> to vector<2x1x64xf32>
    %75 = vector.shape_cast %74 : vector<2x1x64xf32> to vector<2x64xf32>
    %c440 = arith.constant 440 : index
    %c0_80 = arith.constant 0 : index
    %76 = vector.load %arg2[%c440, %c0_80] : memref<560x64xf32, #tpu.memory_space<vmem>>, vector<64x1xf32>
    %cst_81 = arith.constant dense<0.000000e+00> : vector<2x1xf32>
    %77 = tpu.matmul %75, %76, %cst_81 {dimension_numbers = #tpu.dot_dimension_numbers<[1], [0], [0], [1], [0, 0, 1, 1], [], []>} : vector<2x64xf32>, vector<64x1xf32>, vector<2x1xf32> -> vector<2x1xf32>
    %c552 = arith.constant 552 : index
    %c0_82 = arith.constant 0 : index
    %78 = vector.load %arg2[%c552, %c0_82] : memref<560x64xf32, #tpu.memory_space<vmem>>, vector<1x1xf32>
    %79 = vector.broadcast %78 : vector<1x1xf32> to vector<2x1xf32>
    %80 = arith.addf %77, %79 : vector<2x1xf32>
    %c0_83 = arith.constant 0 : index
    %c0_84 = arith.constant 0 : index
    %81 = vector.load %arg3[%c0_83, %c0_84] : memref<2x1xf32, #tpu.memory_space<vmem>>, vector<2x1xf32>
    tpu.vector_store %arg3[%c0_83, %c0_84], %80 {strides = array<i32>} : memref<2x1xf32, #tpu.memory_space<vmem>>, vector<2x1xf32>,
    return
  }
  func.func @transform_0(%arg0: i32) -> (i32, i32) {
    %c0_i32 = arith.constant 0 : i32
    %c0_i32_0 = arith.constant 0 : i32
    return %arg0, %c0_i32 : i32, i32
  }
  func.func @transform_1(%arg0: i32) -> (i32, i32) {
    %c0_i32 = arith.constant 0 : i32
    %c0_i32_0 = arith.constant 0 : i32
    %c0_i32_1 = arith.constant 0 : i32
    return %c0_i32, %c0_i32_0 : i32, i32
  }
  func.func @transform_2(%arg0: i32) -> (i32, i32) {
    %c0_i32 = arith.constant 0 : i32
    %c0_i32_0 = arith.constant 0 : i32
    return %arg0, %c0_i32 : i32, i32
  }
}

</mosaic_0001>

<bundles_post_ra>
// kernel: tpu_custom_call.1
= control target key start
LH: loop header
LB: loop body
LE: loop exit
PB: predicated region body
PF: predicated region fallthrough
CT: control target
= control target key end

     0   :  { %vm15_vm0 = vcmask 91136   ;;  %vm44_vm1 = vcmask 1040384   ;;  %v1438_v3 = vmov 0.0   ;;  %vm35_vm2 = vcmask 31746   ;;  %s1439_s15 = smov 8   ;;  %s1442_s22 = smov 32   ;;  %s1907_s0 = inlined_call_operand.vmem [shape: f32[32,4], index: 0, kind: input, shape index: {}]   ;;  %s1908_s1 = inlined_call_operand.vmem [shape: f32[560,64], index: 1, kind: input, shape index: {}]   ;;  %s1909_s2 = inlined_call_operand.vmem [shape: f32[2,1], index: 2, kind: output, shape index: {}]  }
   0x1   :  { %v1464_v0 = vld [vmem:[%s1907_s0] sm:$0xff]  ;;  %v1469_v1 = vld [vmem:[%s1907_s0 + $0x8] sm:$0xff]  ;;  %v1474_v2 = vld [vmem:[%s1907_s0 + $0x10] sm:$0xff]  ;;  %16 = vst.msk [vmem:[#allocation2] sm:$0x3] %vm15_vm0, %v1438_v3  ;;  %vm22_vm3 = vcmask 1041408  }
   0x2   :  { %17 = vst.msk [vmem:[#allocation2 + $0x30] sm:$0x3] %vm15_vm0, %v1438_v3  ;;  %v45_v4 = vrot.slane %v1464_v0, 7  ;;  %78 = vrot.lane.b32.xlu1 %v1464_v0, %s1439_s15  ;;  %v46_v5 = vrot.slane %v1469_v1, 7  ;;  %v1485_v6 = vld [vmem:[%s1907_s0 + $0x18] sm:$0xff]  ;;  %v23_v7 = vrot.slane %v1464_v0, 6 }
   0x3   :  { %v99_v8 = vld [vmem:[%s1908_s1] sm:$0xff]  ;;  %v48_v9 = vrot.slane %v1474_v2, 7  ;;  %v49_v10 = vrot.slane %v1485_v6, 7  ;;  %v24_v11 = vrot.slane %v1469_v1, 6  ;;  %vm37_vm4 = vcmask 31744   ;;  %s1440_s0 = smov 4  }
   0x4   :  { %v100_v12 = vld [vmem:[%s1908_s1 + $0x8] sm:$0xf]  ;;  %51 = vrot.lane.b32.xlu0 %v45_v4, %s1440_s0  ;;  %36 = vst.msk [vmem:[#allocation2] sm:$0xfc] %vm35_vm2, %v23_v7  ;;  %v26_v13 = vrot.slane %v1474_v2, 6  ;;  %v27_v14 = vrot.slane %v1485_v6, 6  ;;  %v47_v15 = vsel %vm44_vm1, %v45_v4, %v46_v5 }
   0x5   :  { %vm119_vm5 = vcmask 1043456   ;;  %v25_v16 = vsel %vm22_vm3, %v23_v7, %v24_v11  ;;  %v1320_v17 = vpack.c.bf16 %v100_v12, %v99_v8  ;;  %vm1441_vm6 = vmmov 1   ;;  %v294_v32 = vld [vmem:[%s1908_s1 + $0x10] sm:$0xff]  ;;  %v295_v33 = vld [vmem:[%s1908_s1 + $0x18] sm:$0xff]  ;;  %v296_v34 = vld [vmem:[%s1908_s1 + $0x20] sm:$0xff]  ;;  %s1443_s23 = smov 64  }
   0x6   :  { %80 = vrot.lane.b32.xlu1 %v1469_v1, %s1439_s15  ;;  %38 = vst.msk [vmem:[#allocation2 + $0x10] sm:$0xff] %vm37_vm4, %v25_v16  ;;  %v28_v18 = vsel %vm22_vm3, %v26_v13, %v27_v14  ;;  %vm1321_vm7 = vmpackc.low %vm119_vm5, %vm1441_vm6  ;;  %v50_v19 = vsel %vm44_vm1, %v48_v9, %v49_v10  ;;  %vm69_vm8 = vcmask 64545   ;;  %vm90_vm9 = vcmask 97344   ;;  %v297_v36 = vld [vmem:[%s1908_s1 + $0x28] sm:$0xff]  ;;  %v298_v38 = vld [vmem:[%s1908_s1 + $0x30] sm:$0xff] }
   0x7   :  { %41 = vst.msk [vmem:[#allocation2 + $0x30] sm:$0xfc] %vm35_vm2, %v26_v13  ;;  %1322 = vmatprep.subr.msk.bf16.mxu0 %vm1321_vm7, %v1320_v17  ;;  %vm71_vm10 = vcmask 64544   ;;  %vm106_vm11 = vcmask 97280   ;;  %vm212_vm12 = vcmask 779264   ;;  %v1326_v35 = vpack.c.bf16 %v295_v33, %v294_v32  ;;  %v299_v39 = vld [vmem:[%s1908_s1 + $0x38] sm:$0xff] }
   0x8   :  { %42 = vst.msk [vmem:[#allocation2 + $0x40] sm:$0xff] %vm37_vm4, %v28_v18  ;;  %53 = vrot.lane.b32.xlu0 %v47_v15, %s1440_s0  ;;  %1325 = vmatpush3.bf16.msk.msra.mxu0 %vm1321_vm7, %v1320_v17  ;;  %v1330_v37 = vpack.c.bf16 %v297_v36, %v296_v34  ;;  %v1334_v40 = vpack.c.bf16 %v299_v39, %v298_v38  ;;  %v300_v41 = vld [vmem:[%s1908_s1 + $0x40] sm:$0xff]  ;;  %v301_v42 = vld [vmem:[%s1908_s1 + $0x48] sm:$0xff]  ;;  %v302_v44 = vld [vmem:[%s1908_s1 + $0x50] sm:$0xff]  ;;  %vm231_vm13 = vcmask 261122   ;;  %vm233_vm14 = vcmask 261120  }
   0x9   :  { %1327 = vmatprep.subr.bf16.mxu1 %v1326_v35  ;;  %v1338_v43 = vpack.c.bf16 %v301_v42, %v300_v41  ;;  %v303_v45 = vld [vmem:[%s1908_s1 + $0x58] sm:$0xff]  ;;  %v413_v49 = vld [vmem:[%s1908_s1 + $0x70] sm:$0xf]  ;;  %v304_v52 = vld [vmem:[%s1908_s1 + $0x60] sm:$0xff]  ;;  %vm264_vm15 = vcmask 523521   ;;  %vm266_vm0 = vcmask 523520  }
   0xa   :  { %59 = vrot.lane.b32.xlu1 %v50_v19, %s1440_s0  ;;  %1329 = vmatpush3.bf16.msra.mxu1 %v1326_v35  ;;  %v1115_v46 = vld [vmem:[%s1908_s1 + $0x1f8] ss:$0 sm:$0xff]  ;;  %v1342_v47 = vpack.c.bf16 %v303_v45, %v302_v44  ;;  %v305_v53 = vld [vmem:[%s1908_s1 + $0x68] sm:$0xff]  ;;  %vm311_vm2 = vcmask 785408   ;;  %v599_v34 = vld [vmem:[%s1908_s1 + $0x80] sm:$0xff]  ;;  %vm538_vm6 = vcmask 261124  }
   0xb   :  { %1331 = vmatprep.subr.bf16.mxu1 %v1330_v37  ;;  %1249 = vmatprep.subr.msk.mxu0 %vm119_vm5, %v413_v49  ;;  %v1346_v55 = vpack.c.bf16 %v305_v53, %v304_v52  ;;  %v598_v33 = vld [vmem:[%s1908_s1 + $0x78] sm:$0xff]  ;;  %v600_v35 = vld [vmem:[%s1908_s1 + $0x88] sm:$0xff]  ;;  %v1121_v45 = vld [vmem:[%s1908_s1 + $0x200] ss:$0 sm:$0xff]  ;;  %vm570_vm7 = vcmask 523522  }
   0xc   :  { %57 = vrot.lane.b32.xlu0 %v48_v9, %s1440_s0  ;;  %v1350_v36 = vpack.c.bf16 %v599_v34, %v598_v33  ;;  %v602_v39 = vld [vmem:[%s1908_s1 + $0x98] sm:$0xff]  ;;  %v604_v42 = vld [vmem:[%s1908_s1 + $0xa8] sm:$0xff] }
   0xe   :  { %84 = vrot.lane.b32.xlu1 %v1485_v6, %s1439_s15  ;;  %1333 = vmatpush3.bf16.msra.mxu1 %v1330_v37  ;;  %v601_v37 = vld [vmem:[%s1908_s1 + $0x90] sm:$0xff] }
   0xf   :  { %1335 = vmatprep.subr.bf16.mxu1 %v1334_v40  ;;  %v1354_v38 = vpack.c.bf16 %v601_v37, %v600_v35 }
  0x10   :  { %82 = vrot.lane.b32.xlu0 %v1474_v2, %s1439_s15 }
  0x12   :  { %1337 = vmatpush3.bf16.msra.mxu1 %v1334_v40  ;;  %v603_v40 = vld [vmem:[%s1908_s1 + $0xa0] sm:$0xff] }
  0x13   :  { %1339 = vmatprep.subr.bf16.mxu1 %v1338_v43  ;;  %v1358_v41 = vpack.c.bf16 %v603_v40, %v602_v39  ;;  %v918_v39 = vld [vmem:[%s1908_s1 + $0x1a8] sm:$0xff]  ;;  %v919_v40 = vld [vmem:[%s1908_s1 + $0x1b0] sm:$0xff] }
  0x16   :  { %1341 = vmatpush3.bf16.msra.mxu1 %v1338_v43  ;;  %v605_v43 = vld [vmem:[%s1908_s1 + $0xb0] sm:$0xff] }
  0x17   :  { %1343 = vmatprep.subr.bf16.mxu1 %v1342_v47  ;;  %v1362_v44 = vpack.c.bf16 %v605_v43, %v604_v42  ;;  %v1414_v43 = vpack.c.bf16 %v919_v40, %v918_v39 }
  0x1a   :  { %1345 = vmatpush3.bf16.msra.mxu1 %v1342_v47  ;;  %v606_v47 = vld [vmem:[%s1908_s1 + $0xb8] sm:$0xff] }
  0x1b   :  { %1347 = vmatprep.subr.bf16.mxu1 %v1346_v55 }
  0x1e   :  { %1349 = vmatpush3.bf16.msra.mxu1 %v1346_v55 }
  0x74   :  { %v79_v20 = vpop.permute.xlu1 %78 }
  0x76   :  { %v52_v21 = vpop.permute.xlu0 %51 }
  0x77   :  { %70 = vst.msk [vmem:[#allocation2] sm:$0xfe] %vm69_vm8, %v52_v21 }
  0x78   :  { %91 = vst.msk [vmem:[#allocation2] sm:$0xff] %vm90_vm9, %v79_v20  ;;  %v81_v22 = vpop.permute.xlu1 %80 }
  0x7a   :  { %v54_v23 = vpop.permute.xlu0 %53 }
  0x7b   :  { %72 = vst.msk [vmem:[#allocation2 + $0x10] sm:$0xff] %vm71_vm10, %v54_v23 }
  0x7c   :  { %92 = vst.msk [vmem:[#allocation2 + $0x10] sm:$0xff] %vm90_vm9, %v81_v22  ;;  %v60_v24 = vpop.permute.xlu1 %59 }
  0x7d   :  { %76 = vst.msk [vmem:[#allocation2 + $0x40] sm:$0xff] %vm71_vm10, %v60_v24  ;;  %vm737_vm10 = vcmask 523268  }
  0x7e   :  { %v58_v25 = vpop.permute.xlu0 %57 }
  0x7f   :  { %75 = vst.msk [vmem:[#allocation2 + $0x30] sm:$0xfe] %vm69_vm8, %v58_v25  ;;  %v95_v26 = vld [vmem:[#allocation2] sm:$0xff]  ;;  %vm717_vm8 = vcmask 519168  }
  0x80   :  { %1213 = vmatprep.mubr.msk.f32.mxu0 %vm106_vm11, %v95_v26  ;;  %v85_v27 = vpop.permute.xlu1 %84  ;;  %213 = vst.msk [vmem:[#allocation2] sm:$0x3] %vm212_vm12, %v1438_v3 }
  0x81   :  { %94 = vst.msk [vmem:[#allocation2 + $0x40] sm:$0xff] %vm90_vm9, %v85_v27 }
  0x82   :  { %v83_v28 = vpop.permute.xlu0 %82  ;;  %718 = vst.msk [vmem:[#allocation2 + $0x8] sm:$0xf] %vm717_vm8, %v1438_v3  ;;  %720 = vst.msk [vmem:[#allocation2 + $0x38] sm:$0xf] %vm717_vm8, %v1438_v3 }
  0x83   :  { %93 = vst.msk [vmem:[#allocation2 + $0x30] sm:$0xff] %vm90_vm9, %v83_v28  ;;  %v96_v29 = vld [vmem:[#allocation2 + $0x10] sm:$0xff]  ;;  %vm739_vm9 = vcmask 523264  }
  0x84   :  { %1214 = vmatmul.mubr.msk.f32.vlgmr.msra.gmra.mrb[0].mxu0 %vm106_vm11, %v96_v29 }
  0x85   :  { %1250 = vmatpush3.msk.msra.mxu0 %vm119_vm5, %v413_v49 }
  0x86   :  { %1351 = vmatprep.subr.bf16.mxu0 %v1350_v36 }
  0x88   :  { %v98_v30 = vld [vmem:[#allocation2 + $0x40] sm:$0xff] }
  0x8a   :  { %v97_v31 = vld [vmem:[#allocation2 + $0x30] sm:$0xff] }
  0x8b   :  { %1216 = vmatprep.mubr.msk.f32.mxu0 %vm106_vm11, %v97_v31  ;;  %214 = vst.msk [vmem:[#allocation2 + $0x30] sm:$0x3] %vm212_vm12, %v1438_v3  ;;  %vm1035_vm12 = vcmask 1041409  }
  0x8c   :  { %1217 = vmatmul.mubr.msk.f32.gmra.mrb[2].mxu0 %vm106_vm11, %v98_v30  ;;  %vm1445_vm11 = vmmov 0  }
  0x8d   :  { %1251 = vmatprep.mubr.msk.f32.mxu0 %vm37_vm4, %v1464_v0 }
  0x90   :  { %1252 = vmatmul.mubr.msk.f32.vlgmr.msra.gmra.mrb[4].mxu0 %vm37_vm4, %v1469_v1 }
  0x91   :  { %1254 = vmatprep.mubr.msk.f32.mxu0 %vm37_vm4, %v1474_v2  ;;  %1353 = vmatpush3.bf16.msra.mxu0 %v1350_v36 }
  0x92   :  { %1355 = vmatprep.subr.bf16.mxu0 %v1354_v38 }
  0x94   :  { %1255 = vmatmul.mubr.msk.f32.gmra.mrb[6].mxu0 %vm37_vm4, %v1485_v6  ;;  %vm519_vm4 = vcmask 781312  }
  0x95   :  { %1357 = vmatpush3.bf16.msra.mxu0 %v1354_v38 }
  0x96   :  { %1359 = vmatprep.subr.bf16.mxu0 %v1358_v41 }
  0x99   :  { %1361 = vmatpush3.bf16.msra.mxu0 %v1358_v41 }
  0x9a   :  { %1363 = vmatprep.subr.bf16.mxu0 %v1362_v44 }
  0x9d   :  { %1365 = vmatpush3.bf16.msra.mxu0 %v1362_v44 }
 0x157   :  { %v1215_v48 = vpop.f32.mrb[0].mxu0 }
 0x158   :  { %v195_v50 = vadd.f32 %v1215_v48, %v1115_v46  ;;  %v189_v51 = vpop.f32.mrb[1].mxu0  ;;  %v607_v48 = vld [vmem:[%s1908_s1 + $0xc0] sm:$0xff] }
 0x159   :  { %v190_v54 = vadd.f32 %v1115_v46, %v189_v51 }
 0x15a   :  { %v1574_v56 = vmax.f32 %v195_v50, 0.0  ;;  %v1366_v50 = vpack.c.bf16 %v607_v48, %v606_v47  ;;  %v790_v48 = vld [vmem:[%s1908_s1 + $0xd8] sm:$0xff] }
 0x15b   :  { %v208_v57 = vmax.f32 %v190_v54, 0.0 }
 0x15c   :  { %v220_v58 = vrot.slane %v1574_v56, 6  ;;  %v241_v59 = vrot.slane %v1574_v56, 7  ;;  %1367 = vmatprep.subr.bf16.mxu0 %v1366_v50 }
 0x15d   :  { %v219_v60 = vrot.slane %v208_v57, 6  ;;  %v240_v61 = vrot.slane %v208_v57, 7  ;;  %1369 = vmatpush3.bf16.msra.mxu0 %v1366_v50  ;;  %v792_v50 = vld [vmem:[%s1908_s1 + $0xe8] sm:$0xff] }
 0x15f   :  { %v1218_v62 = vpop.f32.mrb[2].mxu0  ;;  %246 = vrot.lane.b32.xlu0 %v240_v61, %s1442_s22  ;;  %v242_v63 = vsel %vm44_vm1, %v240_v61, %v241_v59  ;;  %232 = vst.msk [vmem:[#allocation2] sm:$0xfc] %vm231_vm13, %v219_v60  ;;  %v221_v0 = vsel %vm22_vm3, %v219_v60, %v220_v58  ;;  %v608_v58 = vld [vmem:[%s1908_s1 + $0xc8] sm:$0xff]  ;;  %v609_v60 = vld [vmem:[%s1908_s1 + $0xd0] sm:$0xff] }
 0x160   :  { %v205_v2 = vadd.f32 %v1218_v62, %v1115_v46  ;;  %v199_v4 = vpop.f32.mrb[3].mxu0  ;;  %248 = vrot.lane.b32.xlu1 %v242_v63, %s1442_s22  ;;  %234 = vst.msk [vmem:[#allocation2 + $0x10] sm:$0xff] %vm233_vm14, %v221_v0  ;;  %v1370_v62 = vpack.c.bf16 %v609_v60, %v608_v58  ;;  %v796_v60 = vld [vmem:[%s1908_s1 + $0x108] sm:$0xff] }
 0x161   :  { %v200_v7 = vadd.f32 %v1115_v46, %v199_v4  ;;  %v1126_v46 = vld [vmem:[%s1908_s1 + $0x208] ss:$0 sm:$0xff] }
 0x162   :  { %v1592_v8 = vmax.f32 %v205_v2, 0.0  ;;  %1371 = vmatprep.subr.bf16.mxu0 %v1370_v62 }
 0x163   :  { %v210_v9 = vmax.f32 %v200_v7, 0.0  ;;  %273 = vrot.lane.b32.xlu0 %v208_v57, %s1443_s23  ;;  %v1253_v29 = vpop.f32.mrb[4].mxu0  ;;  %1373 = vmatpush3.bf16.msra.mxu0 %v1370_v62 }
 0x164   :  { %v223_v11 = vrot.slane %v1592_v8, 6  ;;  %v244_v12 = vrot.slane %v1592_v8, 7  ;;  %275 = vrot.lane.b32.xlu1 %v1574_v56, %s1443_s23  ;;  %v496_v30 = vpop.f32.mrb[5].mxu0  ;;  %v502_v53 = vadd.f32 %v1253_v29, %v1126_v46 }
 0x165   :  { %v222_v13 = vrot.slane %v210_v9, 6  ;;  %v243_v14 = vrot.slane %v210_v9, 7  ;;  %v497_v55 = vadd.f32 %v1126_v46, %v496_v30 }
 0x167   :  { %252 = vrot.lane.b32.xlu0 %v243_v14, %s1442_s22  ;;  %v245_v15 = vsel %vm44_vm1, %v243_v14, %v244_v12  ;;  %237 = vst.msk [vmem:[#allocation2 + $0x30] sm:$0xfc] %vm231_vm13, %v222_v13  ;;  %v224_v16 = vsel %vm22_vm3, %v222_v13, %v223_v11  ;;  %vm285_vm1 = vcmask 785920   ;;  %v1256_v31 = vpop.f32.mrb[6].mxu0  ;;  %vm1109_vm13 = vcmask 1024  }
 0x168   :  { %254 = vrot.lane.b32.xlu1 %v245_v15, %s1442_s22  ;;  %238 = vst.msk [vmem:[#allocation2 + $0x40] sm:$0xff] %vm233_vm14, %v224_v16  ;;  %v506_v32 = vpop.f32.mrb[7].mxu0  ;;  %v512_v15 = vadd.f32 %v1256_v31, %v1126_v46 }
 0x16b   :  { %277 = vrot.lane.b32.xlu0 %v210_v9, %s1443_s23 }
 0x16c   :  { %279 = vrot.lane.b32.xlu1 %v1592_v8, %s1443_s23 }
 0x1d1   :  { %v247_v17 = vpop.permute.xlu0 %246 }
 0x1d2   :  { %265 = vst.msk [vmem:[#allocation2] sm:$0xfe] %vm264_vm15, %v247_v17  ;;  %v249_v18 = vpop.permute.xlu1 %248  ;;  %v507_v17 = vadd.f32 %v1126_v46, %v506_v32 }
 0x1d3   :  { %267 = vst.msk [vmem:[#allocation2 + $0x10] sm:$0xff] %vm266_vm0, %v249_v18 }
 0x1d5   :  { %v274_v19 = vpop.permute.xlu0 %273 }
 0x1d6   :  { %286 = vst.msk [vmem:[#allocation2] sm:$0xff] %vm285_vm1, %v274_v19  ;;  %v276_v20 = vpop.permute.xlu1 %275 }
 0x1d7   :  { %287 = vst.msk [vmem:[#allocation2 + $0x10] sm:$0xff] %vm285_vm1, %v276_v20  ;;  %v916_v20 = vld [vmem:[%s1908_s1 + $0x198] sm:$0xff] }
 0x1d9   :  { %v253_v21 = vpop.permute.xlu0 %252 }
 0x1da   :  { %270 = vst.msk [vmem:[#allocation2 + $0x30] sm:$0xfe] %vm264_vm15, %v253_v21  ;;  %v255_v22 = vpop.permute.xlu1 %254  ;;  %v917_v21 = vld [vmem:[%s1908_s1 + $0x1a0] sm:$0xff] }
 0x1db   :  { %271 = vst.msk [vmem:[#allocation2 + $0x40] sm:$0xff] %vm266_vm0, %v255_v22 }
 0x1dd   :  { %v278_v23 = vpop.permute.xlu0 %277  ;;  %v290_v24 = vld [vmem:[#allocation2] sm:$0xff] }
 0x1de   :  { %288 = vst.msk [vmem:[#allocation2 + $0x30] sm:$0xff] %vm285_vm1, %v278_v23  ;;  %v280_v25 = vpop.permute.xlu1 %279  ;;  %1243 = vmatprep.mubr.msk.f32.mxu1 %vm311_vm2, %v290_v24  ;;  %v291_v26 = vld [vmem:[#allocation2 + $0x10] sm:$0xff]  ;;  %v1410_v23 = vpack.c.bf16 %v917_v21, %v916_v20  ;;  %v806_v20 = vld [vmem:[%s1908_s1 + $0x158] sm:$0xff]  ;;  %v807_v21 = vld [vmem:[%s1908_s1 + $0x160] sm:$0xff] }
 0x1df   :  { %289 = vst.msk [vmem:[#allocation2 + $0x40] sm:$0xff] %vm285_vm1, %v280_v25  ;;  %1244 = vmatmul.mubr.msk.f32.vlgmr.msra.gmra.mrb[0].mxu1 %vm311_vm2, %v291_v26 }
 0x1e0   :  { %520 = vst.msk [vmem:[#allocation2] sm:$0xf] %vm519_vm4, %v1438_v3  ;;  %1411 = vmatprep.subr.bf16.mxu0 %v1410_v23 }
 0x1e5   :  { %v292_v27 = vld [vmem:[#allocation2 + $0x30] sm:$0xff] }
 0x1e6   :  { %1246 = vmatprep.mubr.msk.f32.mxu1 %vm311_vm2, %v292_v27  ;;  %v293_v28 = vld [vmem:[#allocation2 + $0x40] sm:$0xff]  ;;  %521 = vst.msk [vmem:[#allocation2 + $0x30] sm:$0xf] %vm519_vm4, %v1438_v3 }
 0x1e7   :  { %1247 = vmatmul.mubr.msk.f32.gmra.mrb[2].mxu1 %vm311_vm2, %v293_v28 }
 0x2b2   :  { %v1245_v49 = vpop.f32.mrb[0].mxu1 }
 0x2b3   :  { %v396_v51 = vadd.f32 %v1245_v49, %v1121_v45  ;;  %v390_v52 = vpop.f32.mrb[1].mxu1  ;;  %v791_v49 = vld [vmem:[%s1908_s1 + $0xe0] sm:$0xff] }
 0x2b4   :  { %v391_v54 = vadd.f32 %v1121_v45, %v390_v52  ;;  %v1375_v52 = vpack.c.bf16 %v791_v49, %v790_v48 }
 0x2b5   :  { %v410_v57 = vmax.f32 %v396_v51, 0.0  ;;  %v1444_v51 = vmov 0.0|0.0  }
 0x2b6   :  { %v409_v61 = vmax.f32 %v391_v54, 0.0  ;;  %1374 = vmatprep.subr.bf16.mxu1 %v1444_v51 }
 0x2b7   :  { %v1664_v63 = vadd.f32 %v502_v53, %v410_v57  ;;  %v793_v53 = vld [vmem:[%s1908_s1 + $0xf0] sm:$0xff]  ;;  %1376 = vmatpush1.bf16.msra.mxu1 %v1375_v52  ;;  %v795_v57 = vld [vmem:[%s1908_s1 + $0x100] sm:$0xff] }
 0x2b8   :  { %v1666_v0 = vadd.f32 %v497_v55, %v409_v61  ;;  %v1378_v54 = vpack.c.bf16 %v793_v53, %v792_v50  ;;  %1377 = vmatprep.subr.bf16.mxu1 %v1444_v51  ;;  %v794_v55 = vld [vmem:[%s1908_s1 + $0xf8] sm:$0xff]  ;;  %v797_v61 = vld [vmem:[%s1908_s1 + $0x110] sm:$0xff] }
 0x2b9   :  { %v527_v2 = vrot.slane %v1664_v63, 4  ;;  %v547_v4 = vrot.slane %v1664_v63, 6  ;;  %v1381_v58 = vpack.c.bf16 %v795_v57, %v794_v55  ;;  %v1384_v62 = vpack.c.bf16 %v797_v61, %v796_v60 }
 0x2ba   :  { %v526_v7 = vrot.slane %v1666_v0, 4  ;;  %v1248_v9 = vpop.f32.mrb[2].mxu1  ;;  %v546_v11 = vrot.slane %v1666_v0, 6 }
 0x2bb   :  { %v406_v13 = vadd.f32 %v1248_v9, %v1121_v45  ;;  %v400_v14 = vpop.f32.mrb[3].mxu1  ;;  %1379 = vmatpush1.bf16.msra.mxu1 %v1378_v54  ;;  %v800_v9 = vld [vmem:[%s1908_s1 + $0x128] sm:$0xff] }
 0x2bc   :  { %v401_v16 = vadd.f32 %v1121_v45, %v400_v14  ;;  %552 = vrot.lane.b32.xlu0 %v546_v11, %s1442_s22  ;;  %v548_v18 = vsel %vm22_vm3, %v546_v11, %v547_v4  ;;  %539 = vst.msk [vmem:[#allocation2] sm:$0xf0] %vm538_vm6, %v526_v7  ;;  %v528_v19 = vsel %vm119_vm5, %v526_v7, %v527_v2  ;;  %v799_v2 = vld [vmem:[%s1908_s1 + $0x120] sm:$0xff]  ;;  %v801_v11 = vld [vmem:[%s1908_s1 + $0x130] sm:$0xff]  ;;  %v802_v14 = vld [vmem:[%s1908_s1 + $0x138] sm:$0xff] }
 0x2bd   :  { %v412_v22 = vmax.f32 %v406_v13, 0.0  ;;  %554 = vrot.lane.b32.xlu1 %v548_v18, %s1442_s22  ;;  %540 = vst.msk [vmem:[#allocation2 + $0x10] sm:$0xff] %vm233_vm14, %v528_v19  ;;  %1380 = vmatprep.subr.bf16.mxu1 %v1444_v51  ;;  %v1390_v13 = vpack.c.bf16 %v801_v11, %v800_v9  ;;  %v805_v18 = vld [vmem:[%s1908_s1 + $0x150] sm:$0xff] }
 0x2be   :  { %v411_v24 = vmax.f32 %v401_v16, 0.0 }
 0x2bf   :  { %v1686_v25 = vadd.f32 %v512_v15, %v412_v22  ;;  %1382 = vmatpush1.bf16.msra.mxu1 %v1381_v58  ;;  %v803_v15 = vld [vmem:[%s1908_s1 + $0x140] sm:$0xff]  ;;  %v1399_v22 = vpack.c.bf16 %v807_v21, %v806_v20 }
 0x2c0   :  { %v517_v26 = vadd.f32 %v507_v17, %v411_v24  ;;  %578 = vrot.lane.b32.xlu0 %v1666_v0, %s1443_s23  ;;  %1383 = vmatprep.subr.bf16.mxu1 %v1444_v51  ;;  %v1393_v16 = vpack.c.bf16 %v803_v15, %v802_v14  ;;  %v804_v17 = vld [vmem:[%s1908_s1 + $0x148] sm:$0xff]  ;;  %v809_v24 = vld [vmem:[%s1908_s1 + $0x170] sm:$0xff]  ;;  %v1019_v20 = vld [vmem:[%s1908_s1 + $0x1c0] sm:$0xff] }
 0x2c1   :  { %v530_v27 = vrot.slane %v1686_v25, 4  ;;  %580 = vrot.lane.b32.xlu1 %v1664_v63, %s1443_s23  ;;  %v550_v28 = vrot.slane %v1686_v25, 6  ;;  %v1396_v19 = vpack.c.bf16 %v805_v18, %v804_v17 }
 0x2c2   :  { %v529_v29 = vrot.slane %v517_v26, 4  ;;  %v549_v30 = vrot.slane %v517_v26, 6 }
 0x2c3   :  { %1385 = vmatpush1.bf16.msra.mxu1 %v1384_v62 }
 0x2c4   :  { %558 = vrot.lane.b32.xlu0 %v549_v30, %s1442_s22  ;;  %v551_v31 = vsel %vm22_vm3, %v549_v30, %v550_v28  ;;  %543 = vst.msk [vmem:[#allocation2 + $0x30] sm:$0xf0] %vm538_vm6, %v529_v29  ;;  %v531_v32 = vsel %vm119_vm5, %v529_v29, %v530_v27  ;;  %1386 = vmatprep.subr.bf16.mxu1 %v1444_v51  ;;  %v810_v27 = vld [vmem:[%s1908_s1 + $0x178] sm:$0xff]  ;;  %v811_v29 = vld [vmem:[%s1908_s1 + $0x180] sm:$0xff] }
 0x2c5   :  { %560 = vrot.lane.b32.xlu1 %v551_v31, %s1442_s22  ;;  %544 = vst.msk [vmem:[#allocation2 + $0x40] sm:$0xff] %vm233_vm14, %v531_v32  ;;  %v1405_v30 = vpack.c.bf16 %v811_v29, %v810_v27  ;;  %v812_v31 = vld [vmem:[%s1908_s1 + $0x188] sm:$0xff]  ;;  %v813_v32 = vld [vmem:[%s1908_s1 + $0x190] sm:$0xff]  ;;  %v1023_v27 = vld [vmem:[%s1908_s1 + $0x1e0] sm:$0xff] }
 0x2c8   :  { %582 = vrot.lane.b32.xlu0 %v517_v26, %s1443_s23 }
 0x2c9   :  { %584 = vrot.lane.b32.xlu1 %v1686_v25, %s1443_s23 }
 0x32e   :  { %v553_v33 = vpop.permute.xlu0 %552 }
 0x32f   :  { %571 = vst.msk [vmem:[#allocation2] sm:$0xfc] %vm570_vm7, %v553_v33  ;;  %v555_v34 = vpop.permute.xlu1 %554  ;;  %v1408_v33 = vpack.c.bf16 %v813_v32, %v812_v31  ;;  %v1025_v31 = vld [vmem:[%s1908_s1 + $0x1f0] sm:$0xff] }
 0x330   :  { %572 = vst.msk [vmem:[#allocation2 + $0x10] sm:$0xff] %vm266_vm0, %v555_v34  ;;  %v1132_v34 = vld [vmem:[%s1908_s1 + $0x210] ss:$0 sm:$0xff] }
 0x332   :  { %v579_v35 = vpop.permute.xlu0 %578 }
 0x333   :  { %590 = vst.msk [vmem:[#allocation2] sm:$0xff] %vm285_vm1, %v579_v35  ;;  %v581_v36 = vpop.permute.xlu1 %580 }
 0x334   :  { %591 = vst.msk [vmem:[#allocation2 + $0x10] sm:$0xff] %vm285_vm1, %v581_v36 }
 0x336   :  { %v559_v37 = vpop.permute.xlu0 %558 }
 0x337   :  { %575 = vst.msk [vmem:[#allocation2 + $0x30] sm:$0xfc] %vm570_vm7, %v559_v37  ;;  %v561_v38 = vpop.permute.xlu1 %560 }
 0x338   :  { %576 = vst.msk [vmem:[#allocation2 + $0x40] sm:$0xff] %vm266_vm0, %v561_v38 }
 0x33a   :  { %v583_v41 = vpop.permute.xlu0 %582  ;;  %v594_v42 = vld [vmem:[#allocation2] sm:$0xff] }
 0x33b   :  { %592 = vst.msk [vmem:[#allocation2 + $0x30] sm:$0xff] %vm285_vm1, %v583_v41  ;;  %v585_v44 = vpop.permute.xlu1 %584  ;;  %1281 = vmatprep.mubr.msk.f32.mxu0 %vm311_vm2, %v594_v42  ;;  %716 = vst [vmem:[#allocation2] sm:$0xf] %v1438_v3  ;;  %v595_v45 = vld [vmem:[#allocation2 + $0x10] sm:$0xff] }
 0x33c   :  { %593 = vst.msk [vmem:[#allocation2 + $0x40] sm:$0xff] %vm285_vm1, %v585_v44  ;;  %1282 = vmatmul.mubr.msk.f32.vlgmr.msra.gmra.mrb[8].mxu0 %vm311_vm2, %v595_v45 }
 0x33d   :  { %1413 = vmatpush3.bf16.msra.mxu0 %v1410_v23  ;;  %v808_v23 = vld [vmem:[%s1908_s1 + $0x168] sm:$0xff] }
 0x33e   :  { %1415 = vmatprep.subr.bf16.mxu0 %v1414_v43 }
 0x341   :  { %1417 = vmatpush3.bf16.msra.mxu0 %v1414_v43 }
 0x342   :  { %v596_v46 = vld [vmem:[#allocation2 + $0x30] sm:$0xff]  ;;  %1418 = vmatprep.subr.bf16.mxu0 %v1444_v51 }
 0x343   :  { %1284 = vmatprep.mubr.msk.f32.mxu0 %vm311_vm2, %v596_v46  ;;  %719 = vst [vmem:[#allocation2 + $0x30] sm:$0xf] %v1438_v3  ;;  %v597_v47 = vld [vmem:[#allocation2 + $0x40] sm:$0xff] }
 0x344   :  { %1285 = vmatmul.mubr.msk.f32.gmra.mrb[10].mxu0 %vm311_vm2, %v597_v47 }
 0x345   :  { %1295 = vmatprep.mubr.msk.f32.mxu0 %vm233_vm14, %v1666_v0  ;;  %v798_v0 = vld [vmem:[%s1908_s1 + $0x118] sm:$0xff] }
 0x346   :  { %v1387_v7 = vpack.c.bf16 %v799_v2, %v798_v0 }
 0x348   :  { %1296 = vmatmul.mubr.msk.f32.vlgmr.msra.gmra.mrb[12].mxu0 %vm233_vm14, %v1664_v63  ;;  %1388 = vmatpush1.bf16.msra.mxu1 %v1387_v7 }
 0x349   :  { %1298 = vmatprep.mubr.msk.f32.mxu0 %vm233_vm14, %v517_v26  ;;  %1389 = vmatprep.subr.bf16.mxu1 %v1444_v51  ;;  %v1402_v26 = vpack.c.bf16 %v809_v24, %v808_v23  ;;  %v1021_v23 = vld [vmem:[%s1908_s1 + $0x1d0] sm:$0xff] }
 0x34c   :  { %1299 = vmatmul.mubr.msk.f32.gmra.mrb[14].mxu0 %vm233_vm14, %v1686_v25  ;;  %1391 = vmatpush1.bf16.msra.mxu1 %v1390_v13 }
 0x34d   :  { %1392 = vmatprep.subr.bf16.mxu1 %v1444_v51  ;;  %1317 = vmatprep.mubr.msk.f32.mxu0 %vm1445_vm11, %v1438_v3 }
 0x350   :  { %1394 = vmatpush1.bf16.msra.mxu1 %v1393_v16 }
 0x351   :  { %1395 = vmatprep.subr.bf16.mxu1 %v1444_v51 }
 0x354   :  { %1397 = vmatpush1.bf16.msra.mxu1 %v1396_v19  ;;  %v1018_v19 = vld [vmem:[%s1908_s1 + $0x1b8] sm:$0xff] }
 0x355   :  { %1398 = vmatprep.subr.bf16.mxu1 %v1444_v51  ;;  %v1419_v21 = vpack.c.bf16 %v1019_v20, %v1018_v19 }
 0x357   :  { %1420 = vmatpush3.bf16.msra.mxu0 %v1419_v21 }
 0x358   :  { %1400 = vmatpush1.bf16.msra.mxu1 %v1399_v22  ;;  %1421 = vmatprep.subr.bf16.mxu0 %v1444_v51  ;;  %v1020_v22 = vld [vmem:[%s1908_s1 + $0x1c8] sm:$0xff] }
 0x359   :  { %1401 = vmatprep.subr.bf16.mxu1 %v1444_v51  ;;  %v1422_v24 = vpack.c.bf16 %v1021_v23, %v1020_v22 }
 0x35b   :  { %1423 = vmatpush3.bf16.msra.mxu0 %v1422_v24 }
 0x35c   :  { %1403 = vmatpush1.bf16.msra.mxu1 %v1402_v26  ;;  %1424 = vmatprep.subr.bf16.mxu0 %v1444_v51  ;;  %v1022_v26 = vld [vmem:[%s1908_s1 + $0x1d8] sm:$0xff] }
 0x35d   :  { %1404 = vmatprep.subr.bf16.mxu1 %v1444_v51  ;;  %v1425_v29 = vpack.c.bf16 %v1023_v27, %v1022_v26 }
 0x35f   :  { %1426 = vmatpush3.bf16.msra.mxu0 %v1425_v29 }
 0x360   :  { %1406 = vmatpush1.bf16.msra.mxu1 %v1405_v30  ;;  %1427 = vmatprep.subr.bf16.mxu0 %v1444_v51  ;;  %v1024_v30 = vld [vmem:[%s1908_s1 + $0x1e8] sm:$0xff] }
 0x361   :  { %1407 = vmatprep.subr.bf16.mxu1 %v1444_v51  ;;  %v1428_v32 = vpack.c.bf16 %v1025_v31, %v1024_v30  ;;  %v1142_v51 = vld [vmem:[%s1908_s1 + $0x220] ss:$0 sm:$0xff] }
 0x363   :  { %1429 = vmatpush3.bf16.msra.mxu0 %v1428_v32 }
 0x364   :  { %1409 = vmatpush1.bf16.msra.mxu1 %v1408_v33 }
 0x40f   :  { %v1283_v35 = vpop.f32.mrb[8].mxu0 }
 0x410   :  { %v699_v36 = vadd.f32 %v1283_v35, %v1132_v34  ;;  %v693_v37 = vpop.f32.mrb[9].mxu0  ;;  %v1137_v35 = vld [vmem:[%s1908_s1 + $0x218] ss:$0 sm:$0xff] }
 0x411   :  { %v694_v38 = vadd.f32 %v1132_v34, %v693_v37 }
 0x412   :  { %v713_v39 = vmax.f32 %v699_v36, 0.0 }
 0x413   :  { %v712_v40 = vmax.f32 %v694_v38, 0.0 }
 0x414   :  { %v726_v41 = vrot.slane %v713_v39, 4  ;;  %v746_v42 = vrot.slane %v713_v39, 6  ;;  %779 = vst.msk [vmem:[#allocation2 + $0x18] sm:$0xff] %vm739_vm9, %v713_v39 }
 0x415   :  { %v725_v43 = vrot.slane %v712_v40, 4  ;;  %778 = vst.msk [vmem:[#allocation2 + $0x8] sm:$0xff] %vm739_vm9, %v712_v40  ;;  %v745_v44 = vrot.slane %v712_v40, 6 }
 0x417   :  { %v1286_v45 = vpop.f32.mrb[10].mxu0  ;;  %751 = vrot.lane.b32.xlu0 %v745_v44, %s1443_s23  ;;  %v747_v46 = vsel %vm22_vm3, %v745_v44, %v746_v42  ;;  %738 = vst.msk [vmem:[#allocation2] sm:$0xf0] %vm737_vm10, %v725_v43  ;;  %v727_v47 = vsel %vm119_vm5, %v725_v43, %v726_v41 }
 0x418   :  { %v709_v48 = vadd.f32 %v1286_v45, %v1132_v34  ;;  %v703_v49 = vpop.f32.mrb[11].mxu0  ;;  %753 = vrot.lane.b32.xlu1 %v747_v46, %s1443_s23  ;;  %740 = vst.msk [vmem:[#allocation2 + $0x10] sm:$0xff] %vm739_vm9, %v727_v47 }
 0x419   :  { %v704_v50 = vadd.f32 %v1132_v34, %v703_v49 }
 0x41a   :  { %v715_v52 = vmax.f32 %v709_v48, 0.0 }
 0x41b   :  { %v714_v53 = vmax.f32 %v704_v50, 0.0  ;;  %v1828_v54 = vpop.f32.mrb[12].mxu0 }
 0x41c   :  { %v729_v55 = vrot.slane %v715_v52, 4  ;;  %v749_v57 = vrot.slane %v715_v52, 6  ;;  %781 = vst.msk [vmem:[#allocation2 + $0x48] sm:$0xff] %vm739_vm9, %v715_v52  ;;  %v999_v58 = vpop.f32.mrb[13].mxu0  ;;  %v783_v60 = vld [vmem:[#allocation2 + $0x8] sm:$0xff]  ;;  %v1004_v39 = vadd.f32 %v1828_v54, %v1142_v51 }
 0x41d   :  { %v728_v61 = vrot.slane %v714_v53, 4  ;;  %780 = vst.msk [vmem:[#allocation2 + $0x38] sm:$0xff] %vm739_vm9, %v714_v53  ;;  %1138 = vmatprep.mubr.msk.f32.mxu1 %vm739_vm9, %v783_v60  ;;  %v748_v62 = vrot.slane %v714_v53, 6  ;;  %v1147_v53 = vld [vmem:[%s1908_s1 + $0x228] ss:$0 sm:$0xff] }
 0x41f   :  { %v1833_v0 = vpop.f32.mrb[14].mxu0  ;;  %757 = vrot.lane.b32.xlu0 %v748_v62, %s1443_s23  ;;  %v750_v2 = vsel %vm22_vm3, %v748_v62, %v749_v57  ;;  %742 = vst.msk [vmem:[#allocation2 + $0x30] sm:$0xf0] %vm737_vm10, %v728_v61  ;;  %v730_v7 = vsel %vm119_vm5, %v728_v61, %v729_v55  ;;  %vm769_vm3 = vcmask 1048066   ;;  %vm771_vm5 = vcmask 1048064  }
 0x420   :  { %v1008_v9 = vpop.f32.mrb[15].mxu0  ;;  %759 = vrot.lane.b32.xlu1 %v750_v2, %s1443_s23  ;;  %743 = vst.msk [vmem:[#allocation2 + $0x40] sm:$0xff] %vm739_vm9, %v730_v7  ;;  %v1013_v46 = vadd.f32 %v1833_v0, %v1142_v51 }
 0x423   :  { %55 = vrot.lane.b32.xlu0 %v46_v5, %s1440_s0  ;;  %v789_v13 = vld [vmem:[#allocation2 + $0x48] sm:$0xff] }
 0x424   :  { %61 = vrot.lane.b32.xlu1 %v49_v10, %s1440_s0 }
 0x427   :  { %250 = vrot.lane.b32.xlu0 %v241_v59, %s1442_s22  ;;  %v785_v59 = vld [vmem:[#allocation2 + $0x18] sm:$0xff] }
 0x428   :  { %256 = vrot.lane.b32.xlu1 %v244_v12, %s1442_s22 }
 0x42b   :  { %556 = vrot.lane.b32.xlu0 %v547_v4, %s1442_s22  ;;  %v787_v4 = vld [vmem:[#allocation2 + $0x38] sm:$0xff] }
 0x42c   :  { %562 = vrot.lane.b32.xlu1 %v550_v28, %s1442_s22 }
 0x42f   :  { %755 = vrot.lane.b32.xlu0 %v746_v42, %s1443_s23 }
 0x430   :  { %761 = vrot.lane.b32.xlu1 %v749_v57, %s1443_s23 }
 0x489   :  { %v752_v1 = vpop.permute.xlu0 %751 }
 0x48a   :  { %770 = vst.msk [vmem:[#allocation2] sm:$0xfc] %vm769_vm3, %v752_v1  ;;  %v754_v5 = vpop.permute.xlu1 %753 }
 0x48b   :  { %772 = vst.msk [vmem:[#allocation2 + $0x10] sm:$0xff] %vm771_vm5, %v754_v5 }
 0x491   :  { %v758_v6 = vpop.permute.xlu0 %757  ;;  %v782_v10 = vld [vmem:[#allocation2] sm:$0xff] }
 0x492   :  { %775 = vst.msk [vmem:[#allocation2 + $0x30] sm:$0xfc] %vm769_vm3, %v758_v6  ;;  %v760_v56 = vpop.permute.xlu1 %759  ;;  %896 = vmatmul.mubr.f32.vlgmr.msra.gmra.mrb[4].mxu1 %v782_v10  ;;  %v784_v12 = vld [vmem:[#allocation2 + $0x10] sm:$0xff] }
 0x493   :  { %776 = vst.msk [vmem:[#allocation2 + $0x40] sm:$0xff] %vm771_vm5, %v760_v56  ;;  %1139 = vmatprep.mubr.msk.f32.mxu1 %vm739_vm9, %v785_v59 }
 0x495   :  { %v56_v8 = vpop.permute.xlu0 %55 }
 0x496   :  { %v62_v63 = vpop.permute.xlu1 %61  ;;  %900 = vmatmul.mubr.f32.gmra.mrb[6].mxu1 %v784_v12 }
 0x497   :  { %1140 = vmatprep.mubr.msk.f32.mxu1 %vm739_vm9, %v787_v4 }
 0x499   :  { %v251_v25 = vpop.permute.xlu0 %250  ;;  %v786_v28 = vld [vmem:[#allocation2 + $0x30] sm:$0xff] }
 0x49a   :  { %v257_v11 = vpop.permute.xlu1 %256  ;;  %905 = vmatmul.mubr.f32.gmra.mrb[8].mxu1 %v786_v28  ;;  %v788_v15 = vld [vmem:[#allocation2 + $0x40] sm:$0xff] }
 0x49b   :  { %1141 = vmatprep.mubr.msk.f32.mxu1 %vm739_vm9, %v789_v13 }
 0x49d   :  { %v557_v14 = vpop.permute.xlu0 %556 }
 0x49e   :  { %v563_v16 = vpop.permute.xlu1 %562  ;;  %909 = vmatmul.mubr.f32.gmra.mrb[10].mxu1 %v788_v15 }
 0x4a1   :  { %v756_v17 = vpop.permute.xlu0 %755 }
 0x4a2   :  { %v762_v18 = vpop.permute.xlu1 %761 }
 0x565   :  { %v897_v33 = vpop.f32.mrb[4].mxu1 }
 0x566   :  { %v898_v34 = vpop.f32.mrb[5].mxu1 }
 0x569   :  { %v901_v36 = vpop.f32.mrb[6].mxu1 }
 0x56a   :  { %v902_v37 = vadd.f32 %v1137_v35, %v901_v36  ;;  %v903_v38 = vpop.f32.mrb[7].mxu1 }
 0x56c   :  { %v914_v40 = vmax.f32 %v902_v37, 0.0 }
 0x56d   :  { %v906_v41 = vpop.f32.mrb[8].mxu1 }
 0x56e   :  { %v1016_v42 = vadd.f32 %v1004_v39, %v914_v40  ;;  %v907_v43 = vpop.f32.mrb[9].mxu1 }
 0x570   :  { %v1033_v49 = vrot.slane %v1016_v42, 7 }
 0x571   :  { %v910_v3 = vpop.f32.mrb[10].mxu1 }
 0x572   :  { %v911_v44 = vadd.f32 %v1137_v35, %v910_v3  ;;  %v912_v45 = vpop.f32.mrb[11].mxu1 }
 0x574   :  { %v915_v47 = vmax.f32 %v911_v44, 0.0 }
 0x576   :  { %v1017_v48 = vadd.f32 %v1013_v46, %v915_v47 }
 0x578   :  { %v1034_v50 = vrot.slane %v1017_v48, 6 }
 0x57a   :  { %v1036_v52 = vsel %vm1035_vm12, %v1034_v50, %v1033_v49 }
 0x57b   :  { %1318 = vmatmul.mubr.msk.f32.vlgmr.msra.gmra.mrb[16].mxu0 %vm739_vm9, %v1036_v52 }
 0x64e   :  { %v1105_v54 = vpop.f32.mrb[16].mxu0 }
 0x64f   :  { %v1106_v55 = vadd.f32 %v1147_v53, %v1105_v54  ;;  %v1319_v57 = vpop.f32.mrb[17].mxu0 }
 0x651   :  { %1110 = vst.msk [vmem:[%s1909_s2] sm:$0x3] %vm1109_vm13, %v1106_v55 }

</bundles_post_ra>
